<compile_context>
chip_gen: v7x
topology: tpu7x:2x2x1
jax: 0.10.0
libtpu: 0.0.40
codegen_flags: <defaults>
</compile_context>

<pallas_src>
import functools
import math

import jax
import jax.numpy as jnp
from jax.experimental import pallas as pl
from jax.experimental.pallas import tpu as pltpu


# ---------------------------------------------------------------------------
# Fused MHA kernel: one batch element per grid step.
# ---------------------------------------------------------------------------
def _mha_fused_kernel(qx_ref, kx_ref, vx_ref,
                      wq_ref, bq_ref, wk_ref, bk_ref,
                      wv_ref, bv_ref, wo_ref, bo_ref,
                      o_ref, *, num_heads):
    f32 = jnp.float32

    # Input projections: (S, d_model) @ (d_model, d_model) + bias, f32 accum.
    q = jnp.dot(qx_ref[...], wq_ref[...], preferred_element_type=f32) + bq_ref[...]
    k = jnp.dot(kx_ref[...], wk_ref[...], preferred_element_type=f32) + bk_ref[...]
    v = jnp.dot(vx_ref[...], vv_w := wv_ref[...], preferred_element_type=f32) + bv_ref[...]
    del vv_w  # (walrus only to keep a single-expression dot; value already used)

    d_model = q.shape[-1]
    dk = d_model // num_heads
    scale = 1.0 / math.sqrt(dk)

    # Per-head scaled dot-product attention (static unroll over heads).
    head_outs = []
    for h in range(num_heads):
        lo, hi = h * dk, (h + 1) * dk
        q_h = q[:, lo:hi] * scale                     # fold 1/sqrt(dk) into Q
        k_h = k[:, lo:hi]
        v_h = v[:, lo:hi]

        # scores = (Q * scale) K^T  -> (Sq, Sk), f32 accumulation on the MXU
        s = jax.lax.dot_general(
            q_h, k_h, (((1,), (1,)), ((), ())),
            preferred_element_type=f32)

        # numerically stable softmax over the key axis
        m = jnp.max(s, axis=-1, keepdims=True)
        p = jnp.exp(s - m)
        l = jnp.sum(p, axis=-1, keepdims=True)
        attn = p / l

        head_outs.append(
            jnp.dot(attn, v_h, preferred_element_type=f32))   # (Sq, dk)

    # Merge heads along the lane axis -> (Sq, d_model), then output projection.
    merged = jnp.concatenate(head_outs, axis=-1)
    out = jnp.dot(merged, wo_ref[...], preferred_element_type=f32) + bo_ref[...]
    o_ref[...] = out.astype(o_ref.dtype)


# ---------------------------------------------------------------------------
# Wrapper: builds the pallas_call.  Weights stored as (in, out) == torch W.T.
# ---------------------------------------------------------------------------
def multi_head_attention(q_in, k_in, v_in, params, num_heads):
    """q_in: (B, Sq, d_model); k_in, v_in: (B, Sk, d_model)."""
    wq, bq, wk, bk, wv, bv, wo, bo = params
    B, Sq, d_model = q_in.shape
    Sk = k_in.shape[1]
    assert d_model % num_heads == 0

    # Resident (constant index_map) weight / bias specs.
    w_spec = pl.BlockSpec((d_model, d_model), lambda b: (0, 0))
    b_spec = pl.BlockSpec((1, d_model), lambda b: (0, 0))

    out = pl.pallas_call(
        functools.partial(_mha_fused_kernel, num_heads=num_heads),
        out_shape=jax.ShapeDtypeStruct((B, Sq, d_model), q_in.dtype),
        grid_spec=pltpu.PrefetchScalarGridSpec(
            num_scalar_prefetch=0,
            grid=(B,),
            in_specs=[
                pl.BlockSpec((None, Sq, d_model), lambda b: (b, 0, 0)),  # Q tokens
                pl.BlockSpec((None, Sk, d_model), lambda b: (b, 0, 0)),  # K tokens
                pl.BlockSpec((None, Sk, d_model), lambda b: (b, 0, 0)),  # V tokens
                w_spec, b_spec,   # Wq, bq
                w_spec, b_spec,   # Wk, bk
                w_spec, b_spec,   # Wv, bv
                w_spec, b_spec,   # Wo, bo
            ],
            out_specs=pl.BlockSpec((None, Sq, d_model), lambda b: (b, 0, 0)),
        ),
        compiler_params=pltpu.CompilerParams(
            dimension_semantics=("parallel",)),
    )(q_in, k_in, v_in,
      wq, bq.reshape(1, d_model),
      wk, bk.reshape(1, d_model),
      wv, bv.reshape(1, d_model),
      wo, bo.reshape(1, d_model))

    return out


# ---------------------------------------------------------------------------
# Parameter init mimicking torch nn.Linear defaults.
# ---------------------------------------------------------------------------
def init_params(key, d_model, dtype=jnp.float32):
    keys = jax.random.split(key, 8)
    bound = 1.0 / math.sqrt(d_model)

    def lin(kw, kb):
        w = jax.random.uniform(kw, (d_model, d_model), dtype, -bound, bound)
        b = jax.random.uniform(kb, (d_model,), dtype, -bound, bound)
        return w, b

    wq, bq = lin(keys[0], keys[1])
    wk, bk = lin(keys[2], keys[3])
    wv, bv = lin(keys[4], keys[5])
    wo, bo = lin(keys[6], keys[7])
    return (wq, bq, wk, bk, wv, bv, wo, bo)


# ---------------------------------------------------------------------------
# Pure-JAX reference
# ---------------------------------------------------------------------------
def mha_reference(q_in, k_in, v_in, params, num_heads):
    wq, bq, wk, bk, wv, bv, wo, bo = params
    B, Sq, d_model = q_in.shape
    Sk = k_in.shape[1]
    dk = d_model // num_heads

    q = (q_in @ wq + bq).reshape(B, Sq, num_heads, dk).transpose(0, 2, 1, 3)
    k = (k_in @ wk + bk).reshape(B, Sk, num_heads, dk).transpose(0, 2, 1, 3)
    v = (v_in @ wv + bv).reshape(B, Sk, num_heads, dk).transpose(0, 2, 1, 3)

    s = jnp.einsum("bhqd,bhkd->bhqk", q, k) / math.sqrt(dk)
    a = jax.nn.softmax(s, axis=-1)
    o = jnp.einsum("bhqk,bhkd->bhqd", a, v)
    o = o.transpose(0, 2, 1, 3).reshape(B, Sq, d_model)
    return o @ wo + bo


if __name__ == "__main__":
    batch, seq, d_model, num_heads = 2, 8, 32, 4

    key = jax.random.PRNGKey(0)
    kq, kk, kv, kp = jax.random.split(key, 4)
    q_in = jax.random.normal(kq, (batch, seq, d_model), dtype=jnp.float32)
    k_in = jax.random.normal(kk, (batch, seq, d_model), dtype=jnp.float32)
    v_in = jax.random.normal(kv, (batch, seq, d_model), dtype=jnp.float32)
    params = init_params(kp, d_model)

    out = multi_head_attention(q_in, k_in, v_in, params, num_heads)
    out = jax.block_until_ready(out)

    ref = mha_reference(q_in, k_in, v_in, params, num_heads)
    assert out.shape == (batch, seq, d_model)
    assert jnp.allclose(out, ref, atol=1e-5, rtol=1e-5), (
        float(jnp.max(jnp.abs(out - ref))))

    print("KERNEL_OK")
</pallas_src>

<mosaic_0001>
module attributes {stable_mosaic.version = 11 : i64} {
  func.func @_mha_fused_kernel(%arg0: i32, %arg1: memref<1x8x32xf32, #tpu.memory_space<vmem>>, %arg2: memref<1x8x32xf32, #tpu.memory_space<vmem>>, %arg3: memref<1x8x32xf32, #tpu.memory_space<vmem>>, %arg4: memref<32x32xf32, #tpu.memory_space<vmem>>, %arg5: memref<1x32xf32, #tpu.memory_space<vmem>>, %arg6: memref<32x32xf32, #tpu.memory_space<vmem>>, %arg7: memref<1x32xf32, #tpu.memory_space<vmem>>, %arg8: memref<32x32xf32, #tpu.memory_space<vmem>>, %arg9: memref<1x32xf32, #tpu.memory_space<vmem>>, %arg10: memref<32x32xf32, #tpu.memory_space<vmem>>, %arg11: memref<1x32xf32, #tpu.memory_space<vmem>>, %arg12: memref<1x8x32xf32, #tpu.memory_space<vmem>>) attributes {dimension_semantics = [#tpu.dimension_semantics<parallel>], iteration_bounds = array<i64: 2>, scalar_prefetch = 0 : i64, scratch_operands = 0 : i64, tpu.core_type = #tpu.core_type<tc>, window_params = [{transform_indices = @transform_0, window_bounds = array<i64: 1, 8, 32>}, {transform_indices = @transform_1, window_bounds = array<i64: 1, 8, 32>}, {transform_indices = @transform_2, window_bounds = array<i64: 1, 8, 32>}, {pipeline_mode = #tpu.pipeline_mode<synchronous>, transform_indices = @transform_3, window_bounds = array<i64: 32, 32>}, {pipeline_mode = #tpu.pipeline_mode<synchronous>, transform_indices = @transform_4, window_bounds = array<i64: 1, 32>}, {pipeline_mode = #tpu.pipeline_mode<synchronous>, transform_indices = @transform_5, window_bounds = array<i64: 32, 32>}, {pipeline_mode = #tpu.pipeline_mode<synchronous>, transform_indices = @transform_6, window_bounds = array<i64: 1, 32>}, {pipeline_mode = #tpu.pipeline_mode<synchronous>, transform_indices = @transform_7, window_bounds = array<i64: 32, 32>}, {pipeline_mode = #tpu.pipeline_mode<synchronous>, transform_indices = @transform_8, window_bounds = array<i64: 1, 32>}, {pipeline_mode = #tpu.pipeline_mode<synchronous>, transform_indices = @transform_9, window_bounds = array<i64: 32, 32>}, {pipeline_mode = #tpu.pipeline_mode<synchronous>, transform_indices = @transform_10, window_bounds = array<i64: 1, 32>}, {transform_indices = @transform_11, window_bounds = array<i64: 1, 8, 32>}]} {
    %c0 = arith.constant 0 : index
    %c0_0 = arith.constant 0 : index
    %c0_1 = arith.constant 0 : index
    %0 = vector.load %arg1[%c0, %c0_0, %c0_1] : memref<1x8x32xf32, #tpu.memory_space<vmem>>, vector<1x8x32xf32>
    %1 = vector.shape_cast %0 : vector<1x8x32xf32> to vector<8x32xf32>
    %c0_2 = arith.constant 0 : index
    %c0_3 = arith.constant 0 : index
    %2 = vector.load %arg4[%c0_2, %c0_3] : memref<32x32xf32, #tpu.memory_space<vmem>>, vector<32x32xf32>
    %cst = arith.constant dense<0.000000e+00> : vector<8x32xf32>
    %3 = tpu.matmul %1, %2, %cst {dimension_numbers = #tpu.dot_dimension_numbers<[1], [0], [0], [1], [0, 0, 1, 1], [], []>} : vector<8x32xf32>, vector<32x32xf32>, vector<8x32xf32> -> vector<8x32xf32>
    %c0_4 = arith.constant 0 : index
    %c0_5 = arith.constant 0 : index
    %4 = vector.load %arg5[%c0_4, %c0_5] : memref<1x32xf32, #tpu.memory_space<vmem>>, vector<1x32xf32>
    %5 = vector.broadcast %4 : vector<1x32xf32> to vector<8x32xf32>
    %6 = arith.addf %3, %5 : vector<8x32xf32>
    %c0_6 = arith.constant 0 : index
    %c0_7 = arith.constant 0 : index
    %c0_8 = arith.constant 0 : index
    %7 = vector.load %arg2[%c0_6, %c0_7, %c0_8] : memref<1x8x32xf32, #tpu.memory_space<vmem>>, vector<1x8x32xf32>
    %8 = vector.shape_cast %7 : vector<1x8x32xf32> to vector<8x32xf32>
    %c0_9 = arith.constant 0 : index
    %c0_10 = arith.constant 0 : index
    %9 = vector.load %arg6[%c0_9, %c0_10] : memref<32x32xf32, #tpu.memory_space<vmem>>, vector<32x32xf32>
    %cst_11 = arith.constant dense<0.000000e+00> : vector<8x32xf32>
    %10 = tpu.matmul %8, %9, %cst_11 {dimension_numbers = #tpu.dot_dimension_numbers<[1], [0], [0], [1], [0, 0, 1, 1], [], []>} : vector<8x32xf32>, vector<32x32xf32>, vector<8x32xf32> -> vector<8x32xf32>
    %c0_12 = arith.constant 0 : index
    %c0_13 = arith.constant 0 : index
    %11 = vector.load %arg7[%c0_12, %c0_13] : memref<1x32xf32, #tpu.memory_space<vmem>>, vector<1x32xf32>
    %12 = vector.broadcast %11 : vector<1x32xf32> to vector<8x32xf32>
    %13 = arith.addf %10, %12 : vector<8x32xf32>
    %c0_14 = arith.constant 0 : index
    %c0_15 = arith.constant 0 : index
    %c0_16 = arith.constant 0 : index
    %14 = vector.load %arg3[%c0_14, %c0_15, %c0_16] : memref<1x8x32xf32, #tpu.memory_space<vmem>>, vector<1x8x32xf32>
    %15 = vector.shape_cast %14 : vector<1x8x32xf32> to vector<8x32xf32>
    %c0_17 = arith.constant 0 : index
    %c0_18 = arith.constant 0 : index
    %16 = vector.load %arg8[%c0_17, %c0_18] : memref<32x32xf32, #tpu.memory_space<vmem>>, vector<32x32xf32>
    %cst_19 = arith.constant dense<0.000000e+00> : vector<8x32xf32>
    %17 = tpu.matmul %15, %16, %cst_19 {dimension_numbers = #tpu.dot_dimension_numbers<[1], [0], [0], [1], [0, 0, 1, 1], [], []>} : vector<8x32xf32>, vector<32x32xf32>, vector<8x32xf32> -> vector<8x32xf32>
    %c0_20 = arith.constant 0 : index
    %c0_21 = arith.constant 0 : index
    %18 = vector.load %arg9[%c0_20, %c0_21] : memref<1x32xf32, #tpu.memory_space<vmem>>, vector<1x32xf32>
    %19 = vector.broadcast %18 : vector<1x32xf32> to vector<8x32xf32>
    %20 = arith.addf %17, %19 : vector<8x32xf32>
    %21 = vector.extract_strided_slice %6 {offsets = [0, 0], sizes = [8, 8], strides = [1, 1]} : vector<8x32xf32> to vector<8x8xf32>
    %cst_22 = arith.constant 0.353553385 : f32
    %22 = vector.broadcast %cst_22 : f32 to vector<8x8xf32>
    %23 = arith.mulf %21, %22 : vector<8x8xf32>
    %24 = vector.extract_strided_slice %13 {offsets = [0, 0], sizes = [8, 8], strides = [1, 1]} : vector<8x32xf32> to vector<8x8xf32>
    %25 = vector.extract_strided_slice %20 {offsets = [0, 0], sizes = [8, 8], strides = [1, 1]} : vector<8x32xf32> to vector<8x8xf32>
    %cst_23 = arith.constant dense<0.000000e+00> : vector<8x8xf32>
    %26 = tpu.matmul %23, %24, %cst_23 {dimension_numbers = #tpu.dot_dimension_numbers<[1], [1], [0], [0], [0, 0, 1, 0], [], []>} : vector<8x8xf32>, vector<8x8xf32>, vector<8x8xf32> -> vector<8x8xf32>
    %cst_24 = arith.constant dense<0xFF800000> : vector<8xf32>
    %27 = vector.multi_reduction <maximumf>, %26, %cst_24 [1] : vector<8x8xf32> to vector<8xf32>
    %28 = vector.shape_cast %27 : vector<8xf32> to vector<8x1xf32>
    %29 = vector.broadcast %28 : vector<8x1xf32> to vector<8x8xf32>
    %30 = arith.subf %26, %29 : vector<8x8xf32>
    %31 = math.exp %30 : vector<8x8xf32>
    %cst_25 = arith.constant dense<0.000000e+00> : vector<8xf32>
    %32 = vector.multi_reduction <add>, %31, %cst_25 [1] : vector<8x8xf32> to vector<8xf32>
    %33 = vector.shape_cast %32 : vector<8xf32> to vector<8x1xf32>
    %34 = vector.broadcast %33 : vector<8x1xf32> to vector<8x8xf32>
    %35 = arith.divf %31, %34 : vector<8x8xf32>
    %cst_26 = arith.constant dense<0.000000e+00> : vector<8x8xf32>
    %36 = tpu.matmul %35, %25, %cst_26 {dimension_numbers = #tpu.dot_dimension_numbers<[1], [0], [0], [1], [0, 0, 1, 1], [], []>} : vector<8x8xf32>, vector<8x8xf32>, vector<8x8xf32> -> vector<8x8xf32>
    %37 = vector.extract_strided_slice %6 {offsets = [0, 8], sizes = [8, 8], strides = [1, 1]} : vector<8x32xf32> to vector<8x8xf32>
    %cst_27 = arith.constant 0.353553385 : f32
    %38 = vector.broadcast %cst_27 : f32 to vector<8x8xf32>
    %39 = arith.mulf %37, %38 : vector<8x8xf32>
    %40 = vector.extract_strided_slice %13 {offsets = [0, 8], sizes = [8, 8], strides = [1, 1]} : vector<8x32xf32> to vector<8x8xf32>
    %41 = vector.extract_strided_slice %20 {offsets = [0, 8], sizes = [8, 8], strides = [1, 1]} : vector<8x32xf32> to vector<8x8xf32>
    %cst_28 = arith.constant dense<0.000000e+00> : vector<8x8xf32>
    %42 = tpu.matmul %39, %40, %cst_28 {dimension_numbers = #tpu.dot_dimension_numbers<[1], [1], [0], [0], [0, 0, 1, 0], [], []>} : vector<8x8xf32>, vector<8x8xf32>, vector<8x8xf32> -> vector<8x8xf32>
    %cst_29 = arith.constant dense<0xFF800000> : vector<8xf32>
    %43 = vector.multi_reduction <maximumf>, %42, %cst_29 [1] : vector<8x8xf32> to vector<8xf32>
    %44 = vector.shape_cast %43 : vector<8xf32> to vector<8x1xf32>
    %45 = vector.broadcast %44 : vector<8x1xf32> to vector<8x8xf32>
    %46 = arith.subf %42, %45 : vector<8x8xf32>
    %47 = math.exp %46 : vector<8x8xf32>
    %cst_30 = arith.constant dense<0.000000e+00> : vector<8xf32>
    %48 = vector.multi_reduction <add>, %47, %cst_30 [1] : vector<8x8xf32> to vector<8xf32>
    %49 = vector.shape_cast %48 : vector<8xf32> to vector<8x1xf32>
    %50 = vector.broadcast %49 : vector<8x1xf32> to vector<8x8xf32>
    %51 = arith.divf %47, %50 : vector<8x8xf32>
    %cst_31 = arith.constant dense<0.000000e+00> : vector<8x8xf32>
    %52 = tpu.matmul %51, %41, %cst_31 {dimension_numbers = #tpu.dot_dimension_numbers<[1], [0], [0], [1], [0, 0, 1, 1], [], []>} : vector<8x8xf32>, vector<8x8xf32>, vector<8x8xf32> -> vector<8x8xf32>
    %53 = vector.extract_strided_slice %6 {offsets = [0, 16], sizes = [8, 8], strides = [1, 1]} : vector<8x32xf32> to vector<8x8xf32>
    %cst_32 = arith.constant 0.353553385 : f32
    %54 = vector.broadcast %cst_32 : f32 to vector<8x8xf32>
    %55 = arith.mulf %53, %54 : vector<8x8xf32>
    %56 = vector.extract_strided_slice %13 {offsets = [0, 16], sizes = [8, 8], strides = [1, 1]} : vector<8x32xf32> to vector<8x8xf32>
    %57 = vector.extract_strided_slice %20 {offsets = [0, 16], sizes = [8, 8], strides = [1, 1]} : vector<8x32xf32> to vector<8x8xf32>
    %cst_33 = arith.constant dense<0.000000e+00> : vector<8x8xf32>
    %58 = tpu.matmul %55, %56, %cst_33 {dimension_numbers = #tpu.dot_dimension_numbers<[1], [1], [0], [0], [0, 0, 1, 0], [], []>} : vector<8x8xf32>, vector<8x8xf32>, vector<8x8xf32> -> vector<8x8xf32>
    %cst_34 = arith.constant dense<0xFF800000> : vector<8xf32>
    %59 = vector.multi_reduction <maximumf>, %58, %cst_34 [1] : vector<8x8xf32> to vector<8xf32>
    %60 = vector.shape_cast %59 : vector<8xf32> to vector<8x1xf32>
    %61 = vector.broadcast %60 : vector<8x1xf32> to vector<8x8xf32>
    %62 = arith.subf %58, %61 : vector<8x8xf32>
    %63 = math.exp %62 : vector<8x8xf32>
    %cst_35 = arith.constant dense<0.000000e+00> : vector<8xf32>
    %64 = vector.multi_reduction <add>, %63, %cst_35 [1] : vector<8x8xf32> to vector<8xf32>
    %65 = vector.shape_cast %64 : vector<8xf32> to vector<8x1xf32>
    %66 = vector.broadcast %65 : vector<8x1xf32> to vector<8x8xf32>
    %67 = arith.divf %63, %66 : vector<8x8xf32>
    %cst_36 = arith.constant dense<0.000000e+00> : vector<8x8xf32>
    %68 = tpu.matmul %67, %57, %cst_36 {dimension_numbers = #tpu.dot_dimension_numbers<[1], [0], [0], [1], [0, 0, 1, 1], [], []>} : vector<8x8xf32>, vector<8x8xf32>, vector<8x8xf32> -> vector<8x8xf32>
    %69 = vector.extract_strided_slice %6 {offsets = [0, 24], sizes = [8, 8], strides = [1, 1]} : vector<8x32xf32> to vector<8x8xf32>
    %cst_37 = arith.constant 0.353553385 : f32
    %70 = vector.broadcast %cst_37 : f32 to vector<8x8xf32>
    %71 = arith.mulf %69, %70 : vector<8x8xf32>
    %72 = vector.extract_strided_slice %13 {offsets = [0, 24], sizes = [8, 8], strides = [1, 1]} : vector<8x32xf32> to vector<8x8xf32>
    %73 = vector.extract_strided_slice %20 {offsets = [0, 24], sizes = [8, 8], strides = [1, 1]} : vector<8x32xf32> to vector<8x8xf32>
    %cst_38 = arith.constant dense<0.000000e+00> : vector<8x8xf32>
    %74 = tpu.matmul %71, %72, %cst_38 {dimension_numbers = #tpu.dot_dimension_numbers<[1], [1], [0], [0], [0, 0, 1, 0], [], []>} : vector<8x8xf32>, vector<8x8xf32>, vector<8x8xf32> -> vector<8x8xf32>
    %cst_39 = arith.constant dense<0xFF800000> : vector<8xf32>
    %75 = vector.multi_reduction <maximumf>, %74, %cst_39 [1] : vector<8x8xf32> to vector<8xf32>
    %76 = vector.shape_cast %75 : vector<8xf32> to vector<8x1xf32>
    %77 = vector.broadcast %76 : vector<8x1xf32> to vector<8x8xf32>
    %78 = arith.subf %74, %77 : vector<8x8xf32>
    %79 = math.exp %78 : vector<8x8xf32>
    %cst_40 = arith.constant dense<0.000000e+00> : vector<8xf32>
    %80 = vector.multi_reduction <add>, %79, %cst_40 [1] : vector<8x8xf32> to vector<8xf32>
    %81 = vector.shape_cast %80 : vector<8xf32> to vector<8x1xf32>
    %82 = vector.broadcast %81 : vector<8x1xf32> to vector<8x8xf32>
    %83 = arith.divf %79, %82 : vector<8x8xf32>
    %cst_41 = arith.constant dense<0.000000e+00> : vector<8x8xf32>
    %84 = tpu.matmul %83, %73, %cst_41 {dimension_numbers = #tpu.dot_dimension_numbers<[1], [0], [0], [1], [0, 0, 1, 1], [], []>} : vector<8x8xf32>, vector<8x8xf32>, vector<8x8xf32> -> vector<8x8xf32>
    %85 = tpu.concatenate %36, %52, %68, %84 in 1 : vector<8x8xf32>, vector<8x8xf32>, vector<8x8xf32>, vector<8x8xf32> -> vector<8x32xf32>
    %c0_42 = arith.constant 0 : index
    %c0_43 = arith.constant 0 : index
    %86 = vector.load %arg10[%c0_42, %c0_43] : memref<32x32xf32, #tpu.memory_space<vmem>>, vector<32x32xf32>
    %cst_44 = arith.constant dense<0.000000e+00> : vector<8x32xf32>
    %87 = tpu.matmul %85, %86, %cst_44 {dimension_numbers = #tpu.dot_dimension_numbers<[1], [0], [0], [1], [0, 0, 1, 1], [], []>} : vector<8x32xf32>, vector<32x32xf32>, vector<8x32xf32> -> vector<8x32xf32>
    %c0_45 = arith.constant 0 : index
    %c0_46 = arith.constant 0 : index
    %88 = vector.load %arg11[%c0_45, %c0_46] : memref<1x32xf32, #tpu.memory_space<vmem>>, vector<1x32xf32>
    %89 = vector.broadcast %88 : vector<1x32xf32> to vector<8x32xf32>
    %90 = arith.addf %87, %89 : vector<8x32xf32>
    %c0_47 = arith.constant 0 : index
    %c0_48 = arith.constant 0 : index
    %c0_49 = arith.constant 0 : index
    %91 = vector.load %arg12[%c0_47, %c0_48, %c0_49] : memref<1x8x32xf32, #tpu.memory_space<vmem>>, vector<1x8x32xf32>
    %92 = vector.shape_cast %91 : vector<1x8x32xf32> to vector<8x32xf32>
    %93 = vector.shape_cast %90 : vector<8x32xf32> to vector<1x8x32xf32>
    tpu.vector_store %arg12[%c0_47, %c0_48, %c0_49], %93 {strides = array<i32>} : memref<1x8x32xf32, #tpu.memory_space<vmem>>, vector<1x8x32xf32>,
    return
  }
  func.func @transform_0(%arg0: i32) -> (i32, i32, i32) {
    %c0_i32 = arith.constant 0 : i32
    %c0_i32_0 = arith.constant 0 : i32
    %c0_i32_1 = arith.constant 0 : i32
    return %arg0, %c0_i32, %c0_i32_0 : i32, i32, i32
  }
  func.func @transform_1(%arg0: i32) -> (i32, i32, i32) {
    %c0_i32 = arith.constant 0 : i32
    %c0_i32_0 = arith.constant 0 : i32
    %c0_i32_1 = arith.constant 0 : i32
    return %arg0, %c0_i32, %c0_i32_0 : i32, i32, i32
  }
  func.func @transform_2(%arg0: i32) -> (i32, i32, i32) {
    %c0_i32 = arith.constant 0 : i32
    %c0_i32_0 = arith.constant 0 : i32
    %c0_i32_1 = arith.constant 0 : i32
    return %arg0, %c0_i32, %c0_i32_0 : i32, i32, i32
  }
  func.func @transform_3(%arg0: i32) -> (i32, i32) {
    %c0_i32 = arith.constant 0 : i32
    %c0_i32_0 = arith.constant 0 : i32
    %c0_i32_1 = arith.constant 0 : i32
    return %c0_i32, %c0_i32_0 : i32, i32
  }
  func.func @transform_4(%arg0: i32) -> (i32, i32) {
    %c0_i32 = arith.constant 0 : i32
    %c0_i32_0 = arith.constant 0 : i32
    %c0_i32_1 = arith.constant 0 : i32
    return %c0_i32, %c0_i32_0 : i32, i32
  }
  func.func @transform_5(%arg0: i32) -> (i32, i32) {
    %c0_i32 = arith.constant 0 : i32
    %c0_i32_0 = arith.constant 0 : i32
    %c0_i32_1 = arith.constant 0 : i32
    return %c0_i32, %c0_i32_0 : i32, i32
  }
  func.func @transform_6(%arg0: i32) -> (i32, i32) {
    %c0_i32 = arith.constant 0 : i32
    %c0_i32_0 = arith.constant 0 : i32
    %c0_i32_1 = arith.constant 0 : i32
    return %c0_i32, %c0_i32_0 : i32, i32
  }
  func.func @transform_7(%arg0: i32) -> (i32, i32) {
    %c0_i32 = arith.constant 0 : i32
    %c0_i32_0 = arith.constant 0 : i32
    %c0_i32_1 = arith.constant 0 : i32
    return %c0_i32, %c0_i32_0 : i32, i32
  }
  func.func @transform_8(%arg0: i32) -> (i32, i32) {
    %c0_i32 = arith.constant 0 : i32
    %c0_i32_0 = arith.constant 0 : i32
    %c0_i32_1 = arith.constant 0 : i32
    return %c0_i32, %c0_i32_0 : i32, i32
  }
  func.func @transform_9(%arg0: i32) -> (i32, i32) {
    %c0_i32 = arith.constant 0 : i32
    %c0_i32_0 = arith.constant 0 : i32
    %c0_i32_1 = arith.constant 0 : i32
    return %c0_i32, %c0_i32_0 : i32, i32
  }
  func.func @transform_10(%arg0: i32) -> (i32, i32) {
    %c0_i32 = arith.constant 0 : i32
    %c0_i32_0 = arith.constant 0 : i32
    %c0_i32_1 = arith.constant 0 : i32
    return %c0_i32, %c0_i32_0 : i32, i32
  }
  func.func @transform_11(%arg0: i32) -> (i32, i32, i32) {
    %c0_i32 = arith.constant 0 : i32
    %c0_i32_0 = arith.constant 0 : i32
    %c0_i32_1 = arith.constant 0 : i32
    return %arg0, %c0_i32, %c0_i32_0 : i32, i32, i32
  }
}

</mosaic_0001>

<bundles_post_ra>
// kernel: tpu_custom_call.1
= control target key start
LH: loop header
LB: loop body
LE: loop exit
PB: predicated region body
PF: predicated region fallthrough
CT: control target
= control target key end

     0   :  { %s2851_s0 = inlined_call_operand.hbm [shape: f32[2,8,32], index: 0, kind: input, shape index: {}]   ;;  %s2852_s1 = inlined_call_operand.hbm [shape: f32[2,8,32], index: 1, kind: input, shape index: {}]   ;;  %s2853_s2 = inlined_call_operand.hbm [shape: f32[2,8,32], index: 2, kind: input, shape index: {}]   ;;  %s2854_s3 = inlined_call_operand.hbm [shape: f32[32,32], index: 3, kind: input, shape index: {}]   ;;  %s2855_s4 = inlined_call_operand.vmem [shape: f32[1,32], index: 4, kind: input, shape index: {}]   ;;  %s2856_s5 = inlined_call_operand.hbm [shape: f32[32,32], index: 5, kind: input, shape index: {}]   ;;  %s2857_s6 = inlined_call_operand.vmem [shape: f32[1,32], index: 6, kind: input, shape index: {}]   ;;  %s2858_s7 = inlined_call_operand.hbm [shape: f32[32,32], index: 7, kind: input, shape index: {}]   ;;  %s2859_s8 = inlined_call_operand.hbm [shape: f32[1,32], index: 8, kind: input, shape index: {}]   ;;  %s2860_s9 = inlined_call_operand.vmem [shape: f32[32,32], index: 9, kind: input, shape index: {}]   ;;  %s2861_s10 = inlined_call_operand.vmem [shape: f32[1,32], index: 10, kind: input, shape index: {}]   ;;  %s2862_s11 = inlined_call_operand.hbm [shape: f32[2,8,32], index: 11, kind: output, shape index: {}]  }
   0x1   :  { %2887 = sst [smem:[#allocation26_spill]] %s2852_s1 }
   0x2   :  { %2888 = sst [smem:[#allocation27_spill]] %s2854_s3 }
   0x3   :  { %2889 = sst [smem:[#allocation28_spill]] %s2855_s4 }
   0x4   :  { %2890 = sst [smem:[#allocation29_spill]] %s2858_s7 }
   0x5   :  { %2891 = sst [smem:[#allocation30_spill]] %s2860_s9 }
   0x6   :  { %2892 = sst [smem:[#allocation31_spill]] %s2861_s10 }
   0x7   :  { %2893 = sst [smem:[#allocation32_spill]] %s2862_s11 }
   0x8   :  { %16 = vsyncpa [#allocation3], 0 }
   0x9   :  { %18 = vsyncpa [#allocation3 + $0x1], 0 }
   0xa   :  { %19 = vsyncpa [#allocation6], 0 }
   0xb   :  { %21 = vsyncpa [#allocation6 + $0x1], 0 }
   0xc   :  { %22 = vsyncpa [#allocation9], 0 }
   0xd   :  { %23 = vsyncpa [#allocation12], 0 }
   0xe   :  { %24 = vsyncpa [#allocation4], 0 }
   0xf   :  { %26 = vsyncpa [#allocation4 + $0x1], 0  ;;  %s2385_s17 = smov 0   ;;  %s2387_s18 = smov 0  }
  0x10   :  { %s2389_s19 = smov 0   ;;  %s2391_s20 = smov 0  }
  0x11 LB: > { %2894 = sst [smem:[#allocation20_spill]] %s2292_s17  ;;  %s2306_s21 = smov [#allocation8]   ;;  %s2304_s20 = sphi %s2391_s20, %s2936_s20   ;;  %s2300_s19 = sphi %s2389_s19, %s2940_s19   ;;  %s2296_s18 = sphi %s2387_s18, %s2939_s18   ;;  %s2292_s17 = sphi %s2385_s17, %s2938_s17  }
  0x12   : > { %2895 = sst [smem:[#allocation21_spill]] %s2304_s20  ;;  %s321_s22 = sshll.u32 %s2306_s21, 4  ;;  %s2411_s22 = int_to_ptr.vmem [resolvable:$true] %s321_s22 }
  0x13   : > { %s2406_s23 = sadd.s32 4294967295, %s2304_s20   ;;  %p1711_p0 = scmp.ge.s32.totalorder %s2304_s20, 1 }
  0x14   : > { %p2873_p1 = scmp.eq.s32.totalorder %s2406_s23, 0  ;;  %p309_p2 = scmp.lt.s32.totalorder %s2304_s20, 3 }
  0x15   : > { %s2307_s25 = smov [#allocation11]   ;;  %s2898_s3 = sld [smem:[#allocation27_spill]] }
  0x16   : > { %p2413_p3 = pnand %p1711_p0, %p309_p2  ;;  %s353_s26 = sshll.u32 %s2307_s25, 4  ;;  %s2426_s26 = int_to_ptr.vmem [resolvable:$true] %s353_s26 }
  0x18   : > { %s2896_s24 = scalar_select %p2413_p3, 1, 0 }
  0x19   : > { %p1924_p5 = pneg %p2413_p3 }
  0x1b   : > { %p2422_p6 = pnand %p1924_p5, %p2873_p1  ;;  %s2024_s30 = scalar_lea.hbm %s2898_s3, 512 }
  0x1c   : > { %p2025_p7 = scmp.ne.s32.totalorder %s2898_s3, %s2024_s30  ;;  %p2031_p11 = scmp.lt.u32.totalorder %s2024_s30, %s2898_s3 }
  0x1d   : > { %s2897_s27 = scalar_select %p2422_p6, 1, 0 }
  0x1e   : > { %p2436_p8 = pneg %p2422_p6 }
  0x20   : > { %s2899_s14 = scalar_select %p2436_p8, 1, 0 }
  0x21   : > { %p2027_p9 = pnand %p2436_p8, %p2025_p7 }
  0x23   : > { %p2028_p10 = pneg %p2027_p9 }
  0x25   : > { %p2033_p12 = pnand %p2031_p11, %p2028_p10 }
  0x27   : > { %2036 = shalt.err (!%p2033_p12)
}
  0x28   : > { %s2037_s21 = scalar_lea.vmem %s2411_s22, 512  ;;  %p2045_p5 = scmp.lt.s32.totalorder %s2411_s22, %s2411_s22 }
  0x29   : > { %p2038_p13 = scmp.ne.s32.totalorder %s2411_s22, %s2037_s21  ;;  %p2046_p4 = scmp.lt.s32.totalorder %s2037_s21, %s2037_s21 }
  0x2b   : > { %p2040_p0 = pnand %p2038_p13, %p2436_p8  ;;  %p2047_p7 = por %p2046_p4, %p2045_p5 }
  0x2d   : > { %p2041_p2 = pneg %p2040_p0 }
  0x2f   : > { %p2048_p9 = pnand %p2047_p7, %p2041_p2 }
  0x31   : > { %2051 = shalt.err (!%p2048_p9)
}
  0x32   : > { %s2865_s25 = smov 128   ;;  %s2866_s28 = smov 8  }
  0x33   : > { %1927 = dma.hbm_to_vmem [thread:$0]  (!%p2422_p6), %s2898_s3, 512, %s2411_s22, [#allocation9], %s2865_s25, %s2865_s25, %s2866_s28  }
  0x34   : > { %s2900_s7 = sld [smem:[#allocation29_spill]] }
  0x3a   : > { %s2052_s15 = scalar_lea.hbm %s2900_s7, 512 }
  0x3b   : > { %p2053_p4 = scmp.ne.s32.totalorder %s2900_s7, %s2052_s15  ;;  %p2059_p12 = scmp.lt.u32.totalorder %s2052_s15, %s2900_s7 }
  0x3d   : > { %p2055_p10 = pnand %p2053_p4, %p2436_p8 }
  0x3f   : > { %p2056_p11 = pneg %p2055_p10 }
  0x41   : > { %p2061_p13 = pnand %p2059_p12, %p2056_p11 }
  0x43   : > { %2064 = shalt.err (!%p2061_p13)
}
  0x44   : > { %s2065_s22 = scalar_lea.vmem %s2426_s26, 512  ;;  %p2073_p7 = scmp.lt.s32.totalorder %s2426_s26, %s2426_s26 }
  0x45   : > { %p2066_p0 = scmp.ne.s32.totalorder %s2426_s26, %s2065_s22  ;;  %p2074_p9 = scmp.lt.s32.totalorder %s2065_s22, %s2065_s22 }
  0x47   : > { %p2068_p2 = pnand %p2066_p0, %p2436_p8  ;;  %p2075_p4 = por %p2074_p9, %p2073_p7 }
  0x49   : > { %p2069_p5 = pneg %p2068_p2 }
  0x4b   : > { %p2076_p10 = pnand %p2075_p4, %p2069_p5 }
  0x4d   : > { %2079 = shalt.err (!%p2076_p10)
}
  0x4e   : > { %1933 = dma.hbm_to_vmem [thread:$0]  (!%p2422_p6), %s2900_s7, 512, %s2426_s26, [#allocation12], %s2865_s25, %s2865_s25, %s2866_s28  }
  0x4f   : > { %s1710_s29 = sadd.s32 4294967294, %s2304_s20   ;;  %s2488_s30 = sadd.s32 1, %s2304_s20  }
  0x50   : > { %2901 = sst [smem:[#allocation22_spill]] %s2488_s30  ;;  %s36_s12 = ssub.s32 %s2304_s20, %s2488_s30 }
  0x51   : > { %s39_s13 = sadd.s32 1, %s2300_s19  ;;  %p37_p11 = scmp.eq.s32.totalorder %s36_s12, 0 }
  0x52   : > { %p46_p12 = scmp.ne.s32.totalorder %s2300_s19, %s2296_s18  ;;  %p47_p13 = scmp.eq.s32.totalorder %s2304_s20, 0 }
  0x53   : > { %p52_p0 = scmp.ne.s32.totalorder %s2296_s18, %s2292_s17  ;;  %p296_p7 = scmp.eq.s32.totalorder %s2406_s23, 1 }
  0x54   : > { %s2499_s15 = scalar_select %p37_p11, %s2300_s19, %s39_s13  }
  0x55   : > { %p48_p2 = por %p47_p13, %p46_p12  ;;  %p2503_p5 = por %p2873_p1, %p52_p0 }
  0x56   : > { %2902 = sst [smem:[#allocation23_spill]] %s2499_s15  ;;  %p302_p9 = scmp.eq.s32.totalorder %s1710_s29, 1 }
  0x57   : > { %s2903_s16 = scalar_select %p2503_p5, 1, 0 }
  0x58   : > { %p1955_p4 = scmp.lt.s32.totalorder %s2304_s20, 2  ;;  %s2867_s26 = sand.u32 1, %s2300_s19  }
  0x59   : > { %p2510_p10 = por %p296_p7, %p46_p12  ;;  %p2514_p3 = por %p302_p9, %p52_p0 }
  0x5a   : > { %s2520_s10 = sshll.u32 %s2867_s26, 3  ;;  %s2523_s11 = sshll.u32 %s2304_s20, 7 }
  0x5b   : > { %s2904_s21 = scalar_select %p2510_p10, 1, 0 }
  0x5c   : > { %s2906_s22 = scalar_select %p2514_p3, 1, 0 }
  0x5d   : > { %2905 = sst [smem:[#allocation24_spill]] %s2904_s21  ;;  %p2525_p11 = pnand %p1955_p4, %p48_p2 }
  0x5e   : > { %2907 = sst [smem:[#allocation25_spill]] %s2906_s22  ;;  %s402_s29 = sand.u32 1, %s2304_s20  }
  0x5f   : > { %s2908_s12 = scalar_select %p2525_p11, 1, 0 }
  0x60   : > { %s2909_s1 = sld [smem:[#allocation26_spill]]  ;;  %s406_s26 = scalar_lea.vmem [#allocation5], %s2520_s10 }
  0x61   : > { %s413_s3 = sshll.u32 %s406_s26, 4  ;;  %s2310_s7 = smov [#allocation10]   ;;  %s2537_s3 = int_to_ptr.vmem [resolvable:$true] %s413_s3 }
  0x62   : > { %s2539_s15 = sshll.u32 %s2310_s7, 4  ;;  %s2541_s30 = scalar_lea.sflag [#allocation6], %s402_s29  ;;  %s338_s15 = int_to_ptr.vmem [resolvable:$true] %s2539_s15 }
  0x63   : > { %p2547_p13 = pneg %p2525_p11 }
  0x65   : > { %s2910_s25 = scalar_select %p2547_p13, 1, 0 }
  0x66   : > { %s2534_s28 = scalar_lea.hbm %s2909_s1, %s2523_s11  ;;  %s2085_s20 = scalar_lea.hbm %s2909_s1, 256 }
  0x67   : > { %s2080_s22 = scalar_lea.hbm %s2534_s28, 128  ;;  %p2086_p7 = scmp.lt.u32.totalorder %s2534_s28, %s2909_s1 }
  0x68   : > { %p2081_p12 = scmp.ne.s32.totalorder %s2534_s28, %s2080_s22  ;;  %p2087_p9 = scmp.lt.u32.totalorder %s2085_s20, %s2080_s22 }
  0x69   : > { %p2089_p1 = scmp.lt.u32.totalorder %s2080_s22, %s2534_s28 }
  0x6a   : > { %p2083_p0 = pnand %p2547_p13, %p2081_p12  ;;  %p2088_p4 = por %p2087_p9, %p2086_p7 }
  0x6c   : > { %p2084_p2 = pneg %p2083_p0  ;;  %p2090_p3 = por %p2089_p1, %p2088_p4 }
  0x6e   : > { %p2091_p10 = pnand %p2090_p3, %p2084_p2 }
  0x70   : > { %2094 = shalt.err (!%p2091_p10)
}
  0x71   : > { %s2095_s29 = scalar_lea.vmem %s2537_s3, 128  ;;  %s2311_s13 = smov [#allocation5]  }
  0x72   : > { %p2096_p12 = scmp.ne.s32.totalorder %s2537_s3, %s2095_s29  ;;  %s2100_s26 = sshll.u32 %s2311_s13, 4  ;;  %s2101_s26 = int_to_ptr.vmem [resolvable:$false] %s2100_s26 }
  0x73   : > { %s2102_s17 = scalar_lea.vmem %s2101_s26, 256  ;;  %p2103_p6 = scmp.lt.s32.totalorder %s2537_s3, %s2101_s26 }
  0x74   : > { %p2098_p0 = pnand %p2096_p12, %p2547_p13  ;;  %p2104_p8 = scmp.lt.s32.totalorder %s2102_s17, %s2095_s29 }
  0x76   : > { %p2099_p5 = pneg %p2098_p0  ;;  %p2105_p7 = por %p2104_p8, %p2103_p6 }
  0x78   : > { %p2106_p9 = pnand %p2105_p7, %p2099_p5 }
  0x7a   : > { %2109 = shalt.err (!%p2106_p9)
}
  0x7b   : > { %1943 = dma.hbm_to_vmem [thread:$0]  (!%p2525_p11), %s2534_s28, 128, %s2537_s3, %s2541_s30  }
  0x7c   : > { %s2110_s7 = scalar_lea.hbm %s2856_s5, 512  ;;  %p2911_p3 = scmp.ne.s32.totalorder %s2899_s14, 0 }
  0x7d   : > { %p2111_p1 = scmp.ne.s32.totalorder %s2856_s5, %s2110_s7  ;;  %p2117_p5 = scmp.lt.u32.totalorder %s2110_s7, %s2856_s5 }
  0x7f   : > { %p2113_p6 = pnand %p2111_p1, %p2911_p3 }
  0x81   : > { %p2114_p8 = pneg %p2113_p6 }
  0x83   : > { %p2119_p10 = pnand %p2117_p5, %p2114_p8 }
  0x85   : > { %2122 = shalt.err (!%p2119_p10)
}
  0x86   : > { %s2123_s17 = scalar_lea.vmem %s338_s15, 512  ;;  %p2131_p0 = scmp.lt.s32.totalorder %s338_s15, %s338_s15 }
  0x87   : > { %p2124_p2 = scmp.ne.s32.totalorder %s338_s15, %s2123_s17  ;;  %p2132_p7 = scmp.lt.s32.totalorder %s2123_s17, %s2123_s17 }
  0x89   : > { %p2126_p4 = pnand %p2124_p2, %p2911_p3  ;;  %p2133_p9 = por %p2132_p7, %p2131_p0 }
  0x8b   : > { %p2127_p12 = pneg %p2126_p4 }
  0x8d   : > { %p2134_p11 = pnand %p2133_p9, %p2127_p12 }
  0x8f   : > { %2137 = shalt.err (!%p2134_p11)
}
  0x90   : > { %p2912_p1 = scmp.ne.s32.totalorder %s2897_s27, 0  ;;  %s2913_s1 = smov 8  }
  0x91   : > { %s2914_s3 = smov 128   ;;  %s2312_s22 = smov [#allocation13]  }
  0x92   : > { %1930 = dma.hbm_to_vmem [thread:$0]  (!%p2912_p1), %s2856_s5, 512, %s338_s15, [#allocation9], %s2914_s3, %s2914_s3, %s2913_s1  }
  0x93   : > { %s367_s7 = sshll.u32 %s2312_s22, 4  ;;  %s2138_s26 = scalar_lea.hbm %s2859_s8, 16  ;;  %s368_s7 = int_to_ptr.vmem [resolvable:$true] %s367_s7 }
  0x94   : > { %p2139_p11 = scmp.ne.s32.totalorder %s2859_s8, %s2138_s26  ;;  %p2145_p5 = scmp.lt.u32.totalorder %s2138_s26, %s2859_s8 }
  0x96   : > { %p2141_p6 = pnand %p2139_p11, %p2911_p3 }
  0x98   : > { %p2142_p8 = pneg %p2141_p6 }
  0x9a   : > { %p2147_p10 = pnand %p2145_p5, %p2142_p8 }
  0x9c   : > { %2150 = shalt.err (!%p2147_p10)
}
  0x9d   : > { %s2151_s15 = scalar_lea.vmem %s368_s7, 16  ;;  %s2158_s1 = scalar_lea.vmem %s368_s7, 32 }
  0x9e   : > { %p2152_p2 = scmp.ne.s32.totalorder %s368_s7, %s2151_s15  ;;  %p2159_p0 = scmp.lt.s32.totalorder %s368_s7, %s368_s7 }
  0x9f   : > { %p2160_p7 = scmp.lt.s32.totalorder %s2158_s1, %s2151_s15 }
  0xa0   : > { %p2154_p4 = pnand %p2152_p2, %p2911_p3 }
  0xa1   : > { %p2161_p9 = por %p2160_p7, %p2159_p0 }
  0xa2   : > { %p2155_p12 = pneg %p2154_p4 }
  0xa4   : > { %p2162_p13 = pnand %p2161_p9, %p2155_p12 }
  0xa6   : > { %2165 = shalt.err (!%p2162_p13)
}
  0xa7   : > { %1936 = dma.hbm_to_vmem [thread:$0]  (!%p2912_p1), %s2859_s8, 16, %s368_s7, [#allocation12]  }
  0xa8   : > { %s2615_s14 = scalar_lea.hbm %s2851_s0, %s2523_s11  ;;  %s388_s28 = scalar_lea.vmem [#allocation2], %s2520_s10 }
  0xa9   : > { %s395_s20 = sshll.u32 %s388_s28, 4  ;;  %s2915_s27 = sand.u32 1, %s2300_s19   ;;  %s396_s20 = int_to_ptr.vmem [resolvable:$true] %s395_s20 }
  0xaa   : > { %s385_s22 = scalar_lea.sflag [#allocation3], %s2915_s27  ;;  %s2166_s13 = scalar_lea.hbm %s2615_s14, 128 }
  0xab   : > { %p2167_p13 = scmp.ne.s32.totalorder %s2615_s14, %s2166_s13  ;;  %p2916_p3 = scmp.ne.s32.totalorder %s2910_s25, 0 }
  0xac   : > { %s2171_s26 = scalar_lea.hbm %s2851_s0, 256  ;;  %p2172_p1 = scmp.lt.u32.totalorder %s2615_s14, %s2851_s0 }
  0xad   : > { %p2169_p11 = pnand %p2167_p13, %p2916_p3  ;;  %p2173_p8 = scmp.lt.u32.totalorder %s2171_s26, %s2166_s13 }
  0xae   : > { %p2175_p10 = scmp.lt.u32.totalorder %s2166_s13, %s2615_s14 }
  0xaf   : > { %p2170_p6 = pneg %p2169_p11  ;;  %p2174_p5 = por %p2173_p8, %p2172_p1 }
  0xb1   : > { %p2176_p2 = por %p2175_p10, %p2174_p5 }
  0xb3   : > { %p2177_p4 = pnand %p2176_p2, %p2170_p6 }
  0xb5   : > { %2180 = shalt.err (!%p2177_p4)
}
  0xb6   : > { %s2181_s1 = scalar_lea.vmem %s396_s20, 128  ;;  %s2313_s21 = smov [#allocation2]  }
  0xb7   : > { %p2182_p12 = scmp.ne.s32.totalorder %s396_s20, %s2181_s1  ;;  %s2186_s3 = sshll.u32 %s2313_s21, 4  ;;  %s2187_s3 = int_to_ptr.vmem [resolvable:$false] %s2186_s3 }
  0xb8   : > { %s2188_s4 = scalar_lea.vmem %s2187_s3, 256  ;;  %p2189_p9 = scmp.lt.s32.totalorder %s396_s20, %s2187_s3 }
  0xb9   : > { %p2184_p0 = pnand %p2182_p12, %p2916_p3  ;;  %p2190_p13 = scmp.lt.s32.totalorder %s2188_s4, %s2181_s1 }
  0xbb   : > { %p2185_p7 = pneg %p2184_p0  ;;  %p2191_p11 = por %p2190_p13, %p2189_p9 }
  0xbd   : > { %p2192_p1 = pnand %p2191_p11, %p2185_p7 }
  0xbf   : > { %2195 = shalt.err (!%p2192_p1)
}
  0xc0   : > { %p2917_p8 = scmp.ne.s32.totalorder %s2908_s12, 0  ;;  %s2641_s27 = scalar_lea.hbm %s2853_s2, %s2523_s11 }
  0xc1   : > { %s424_s13 = scalar_lea.vmem [#allocation7], %s2520_s10  ;;  %s2196_s29 = scalar_lea.hbm %s2641_s27, 128 }
  0xc2   : > { %1940 = dma.hbm_to_vmem [thread:$0]  (!%p2917_p8), %s2615_s14, 128, %s396_s20, %s385_s22  }
  0xc3   : > { %s431_s7 = sshll.u32 %s424_s13, 4  ;;  %p2197_p6 = scmp.ne.s32.totalorder %s2641_s27, %s2196_s29  ;;  %s432_s7 = int_to_ptr.vmem [resolvable:$true] %s431_s7 }
  0xc4   : > { %s2201_s14 = scalar_lea.hbm %s2853_s2, 256  ;;  %p2202_p2 = scmp.lt.u32.totalorder %s2641_s27, %s2853_s2 }
  0xc5   : > { %p2199_p5 = pnand %p2197_p6, %p2916_p3  ;;  %p2203_p4 = scmp.lt.u32.totalorder %s2201_s14, %s2196_s29 }
  0xc6   : > { %p2205_p0 = scmp.lt.u32.totalorder %s2196_s29, %s2641_s27 }
  0xc7   : > { %p2200_p10 = pneg %p2199_p5  ;;  %p2204_p12 = por %p2203_p4, %p2202_p2 }
  0xc9   : > { %p2206_p7 = por %p2205_p0, %p2204_p12 }
  0xcb   : > { %p2207_p9 = pnand %p2206_p7, %p2200_p10 }
  0xcd   : > { %2210 = shalt.err (!%p2207_p9)
}
  0xce   : > { %s2211_s10 = scalar_lea.vmem %s432_s7, 128  ;;  %s2314_s11 = smov [#allocation7]  }
  0xcf   : > { %p2212_p13 = scmp.ne.s32.totalorder %s432_s7, %s2211_s10  ;;  %s2216_s15 = sshll.u32 %s2314_s11, 4  ;;  %s2217_s15 = int_to_ptr.vmem [resolvable:$false] %s2216_s15 }
  0xd0   : > { %s2218_s1 = scalar_lea.vmem %s2217_s15, 256  ;;  %p2219_p6 = scmp.lt.s32.totalorder %s432_s7, %s2217_s15 }
  0xd1   : > { %p2214_p11 = pnand %p2212_p13, %p2916_p3  ;;  %p2220_p5 = scmp.lt.s32.totalorder %s2218_s1, %s2211_s10 }
  0xd3   : > { %p2215_p1 = pneg %p2214_p11  ;;  %p2221_p8 = por %p2220_p5, %p2219_p6 }
  0xd5   : > { %p2222_p2 = pnand %p2221_p8, %p2215_p1 }
  0xd7   : > { %2225 = shalt.err (!%p2222_p2)
}
  0xd8   : > { %p2918_p4 = scmp.ne.s32.totalorder %s2908_s12, 0  ;;  %p2919_p10 = scmp.ne.s32.totalorder %s2896_s24, 0 }
  0xd9   : > { %s2665_s25 = sand.u32 (!%p2919_p10), 1, %s2296_s18   ;;  %p2920_p3 = scmp.ne.s32.totalorder (!%p2919_p10), %s2903_s16, 0 }
  0xda   : > { %1946 = dma.hbm_to_vmem [thread:$0]  (!%p2918_p4), %s2641_s27, 128, %s432_s7, %s2541_s30  }
  0xdb   : > { %440 = sbr.rel (%p2919_p10) target bundleno = 2140 (0x85c), region = 64  ;;  %s2668_s21 = sshll.u32 (!%p2919_p10), %s2665_s25, 3 }
  0xdc   : > { %s443_s3 = scalar_lea.sflag (!%p2919_p10), [#allocation3], %s2665_s25  ;;  %s446_s4 = scalar_lea.vmem (!%p2919_p10), [#allocation2], %s2668_s21 }
  0xe2   : > { %2271 = dma.done.wait (%p2920_p3), %s443_s3, 128  }
  0xe3   : > { %2273 = vsyncadd (%p2920_p3), %s443_s3, 4294967168  ;;  %s451_s24 = sand.u32 1, %s2406_s23   ;;  %s455_s12 = scalar_lea.vmem [#allocation5], %s2668_s21 }
  0xe4   : > { %s452_s30 = scalar_lea.sflag [#allocation6], %s451_s24 }
  0xe5   : > { %2275 = dma.done.wait (%p2920_p3), %s452_s30, 256  }
  0xe6   : > { %2277 = vsyncadd (%p2920_p3), %s452_s30, 4294967040  ;;  %s464_s9 = scalar_lea.vmem [#allocation7], %s2668_s21  ;;  %p2921_p8 = scmp.eq.s32.totalorder %s2406_s23, 0 }
  0xe8   : > { %2279 = dma.done.wait (%p2921_p8), [#allocation9], 1024   ;;  %p2922_p12 = pmov %p2921_p8 }
  0xe9   : > { %p2923_p0 = pmov %p2921_p8 }
  0xea   : > { %2281 = vsyncadd (%p2922_p12), [#allocation9], 4294966272 }
  0xeb   : > { %2283 = dma.done.wait (%p2923_p0), [#allocation12], 528   ;;  %p2924_p7 = pmov %p2923_p0 }
  0xec   : > { %v2315_v0 = vmov 0.0|0.0   ;;  %vm2316_vm0 = vmmov 0   ;;  %v2317_v1 = vmov 0.0   ;;  %v616_v2 = vld [vmem:[#allocation10] sm:$0xff]  ;;  %v617_v3 = vld [vmem:[#allocation10 + $0x8] sm:$0xff]  ;;  %v618_v7 = vld [vmem:[#allocation10 + $0x10] sm:$0xff] }
  0xed   : > { %2285 = vsyncadd (%p2924_p7), [#allocation12], 4294966768  ;;  %1882 = vmatprep.subr.bf16.mxu1 %v2315_v0  ;;  %1876 = vmatprep.subr.bf16.mxu0 %v2315_v0  ;;  %v530_v4 = vld [vmem:[#allocation8] sm:$0xff]  ;;  %v1883_v5 = vpack.c.bf16 %v617_v3, %v616_v2  ;;  %v531_v6 = vld [vmem:[#allocation8 + $0x8] sm:$0xff]  ;;  %vm541_vm1 = vcmask 261120   ;;  %s2925_s7 = sld [smem:[#allocation28_spill]] }
  0xee   : > { %1811 = vmatprep.mubr.msk.f32.mxu1 %vm2316_vm0, %v2317_v1  ;;  %1800 = vmatprep.mubr.msk.f32.mxu0 %vm2316_vm0, %v2317_v1  ;;  %v619_v8 = vld [vmem:[#allocation10 + $0x18] sm:$0xff]  ;;  %v1877_v9 = vpack.c.bf16 %v531_v6, %v530_v4  ;;  %v532_v10 = vld [vmem:[#allocation8 + $0x10] sm:$0xff]  ;;  %v615_v14 = vld [vmem:[%s455_s12] sm:$0xff]  ;;  %vm786_vm2 = vcmask 64512   ;;  %s2318_s29 = smov 120   ;;  %s2319_s26 = smov 112  }
  0xef   : > { %v533_v11 = vld [vmem:[#allocation8 + $0x18] sm:$0xff]  ;;  %1884 = vmatpush3.bf16.msra.mxu1 %v1883_v5  ;;  %v1886_v12 = vpack.c.bf16 %v619_v8, %v618_v7  ;;  %v1734_v16 = vld [vmem:[%s2857_s6] ss:$0 sm:$0xff]  ;;  %s2320_s17 = smov 104   ;;  %v701_v25 = vld [vmem:[#allocation11] sm:$0xff]  ;;  %s2926_s22 = sld [smem:[#allocation30_spill]] }
  0xf0   : > { %1878 = vmatpush3.bf16.msra.mxu0 %v1877_v9  ;;  %1885 = vmatprep.subr.bf16.mxu1 %v2315_v0  ;;  %v1880_v13 = vpack.c.bf16 %v533_v11, %v532_v10  ;;  %v529_v15 = vld [vmem:[%s446_s4] sm:$0xff]  ;;  %v702_v26 = vld [vmem:[#allocation11 + $0x8] sm:$0xff]  ;;  %v1736_v40 = vld [vmem:[#allocation13] ss:$0 sm:$0xff]  ;;  %s2321_s24 = smov 8   ;;  %s2322_s30 = smov 16  }
  0xf1   : > { %1879 = vmatprep.subr.bf16.mxu0 %v2315_v0  ;;  %v703_v27 = vld [vmem:[#allocation11 + $0x10] sm:$0xff]  ;;  %v1889_v28 = vpack.c.bf16 %v702_v26, %v701_v25  ;;  %v704_v29 = vld [vmem:[#allocation11 + $0x18] sm:$0xff]  ;;  %s2323_s12 = smov 24   ;;  %vm1456_vm3 = vcmask 130048   ;;  %vm1458_vm4 = vcmask 195584   ;;  %s2928_s27 = sld [smem:[#allocation31_spill]] }
  0xf2   : > { %v1892_v30 = vpack.c.bf16 %v704_v29, %v703_v27  ;;  %v700_v31 = vld [vmem:[%s464_s9] sm:$0xff]  ;;  %s2927_s9 = sld [smem:[#allocation24_spill]]  ;;  %s1753_s13 = sshll.u32 %s2406_s23, 7 }
  0xf3   : > { %1887 = vmatpush3.bf16.msra.mxu1 %v1886_v12  ;;  %v1732_v17 = vld [vmem:[%s2925_s7] ss:$0 sm:$0xff]  ;;  %s528_s7 = scalar_lea.vmem [#allocation14], %s2668_s21  ;;  %s2929_s14 = sld [smem:[#allocation32_spill]] }
  0xf4   : > { %1881 = vmatpush3.bf16.msra.mxu0 %v1880_v13  ;;  %1825 = vmatprep.subr.mxu1 %v2317_v1  ;;  %s1546_s10 = scalar_lea.sflag [#allocation4], %s2665_s25  ;;  %s2324_s23 = smov [#allocation14]  }
  0xf5   : > { %1888 = vmatprep.subr.bf16.mxu0 %v2315_v0  ;;  %v1460_v29 = vld [vmem:[%s2926_s22] sm:$0xff]  ;;  %s2230_s21 = sshll.u32 %s2324_s23, 4  ;;  %s2231_s21 = int_to_ptr.vmem [resolvable:$false] %s2230_s21 }
  0xf6   : > { %1812 = vmatmul.mubr.msk.f32.vlgmr.msra.gmra.mrb[0].mxu1 %vm541_vm1, %v615_v14  ;;  %s2232_s15 = scalar_lea.vmem %s2231_s21, 256 }
  0xf7   : > { %1801 = vmatmul.mubr.msk.f32.vlgmr.msra.gmra.mrb[0].mxu0 %vm541_vm1, %v529_v15  ;;  %1827 = vmatprep.mubr.msk.f32.mxu1 %vm2316_vm0, %v2317_v1 }
  0xf8   : > { %1822 = vmatprep.mubr.msk.f32.mxu0 %vm2316_vm0, %v2317_v1  ;;  %1890 = vmatpush3.bf16.msra.mxu0 %v1889_v28  ;;  %p2930_p13 = scmp.ne.s32.totalorder %s2927_s9, 0 }
  0xf9   : > { %1891 = vmatprep.subr.bf16.mxu0 %v2315_v0  ;;  %s2806_s20 = scalar_lea.hbm %s2929_s14, %s1753_s13 }
  0xfc   : > { %1893 = vmatpush3.bf16.msra.mxu0 %v1892_v30  ;;  %v1461_v30 = vld [vmem:[%s2926_s22 + $0x8] sm:$0xff] }
  0xfd   : > { %1845 = vmatprep.subr.mxu0 %v2317_v1 }
  0xff   : > { %1823 = vmatmul.mubr.msk.f32.vlgmr.msra.gmra.mrb[2].mxu0 %vm541_vm1, %v700_v31  ;;  %v1895_v31 = vpack.c.bf16 %v1461_v30, %v1460_v29 }
 0x100   : > { %1847 = vmatprep.mubr.msk.f32.mxu0 %vm2316_vm0, %v2317_v1 }
 0x1c9   : > { %v696_v18 = vpop.f32.mrb[0].mxu1 }
 0x1ca   : > { %v697_v19 = vadd.f32 %v1734_v16, %v696_v18  ;;  %v611_v20 = vpop.f32.mrb[0].mxu0  ;;  %v1813_v21 = vpop.f32.mrb[1].mxu1 }
 0x1cb   : > { %v612_v22 = vadd.f32 %v1732_v17, %v611_v20  ;;  %v1802_v23 = vpop.f32.mrb[1].mxu0 }
 0x1cc   : > { %949 = vrot.lane.b32.xlu1 %v697_v19, %s2318_s29  ;;  %1826 = vmatpush3.xpose.msk.msra.mxu1 %vm786_vm2, %v697_v19 }
 0x1cd   : > { %v785_v24 = vmul.f32 0.35355338, %v612_v22  ;;  %1830 = vmatprep.subr.mxu1 %v2317_v1 }
 0x1cf   : > { %1828 = vmatmul.mubr.msk.f32.vlgmr.msra.gmra.mrb[2].mxu1 %vm786_vm2, %v785_v24 }
 0x1d0   : > { %947 = vrot.lane.b32.xlu1 %v785_v24, %s2318_s29  ;;  %1832 = vmatprep.mubr.msk.f32.mxu1 %vm2316_vm0, %v2317_v1 }
 0x1d2   : > { %v781_v41 = vpop.f32.mrb[2].mxu0 }
 0x1d3   : > { %v2736_v42 = vadd.f32 %v1736_v40, %v781_v41  ;;  %v1824_v43 = vpop.f32.mrb[3].mxu0 }
 0x1d4   : > { %1113 = vrot.lane.b32.xlu1 %v785_v24, %s2319_s26 }
 0x1d5   : > { %1831 = vmatpush3.msra.mxu1 %v2736_v42 }
 0x1d6   : > { %1835 = vmatprep.subr.mxu1 %v2317_v1 }
 0x1d8   : > { %1280 = vrot.lane.b32.xlu1 %v697_v19, %s2320_s17 }
 0x1dc   : > { %1278 = vrot.lane.b32.xlu1 %v785_v24, %s2320_s17 }
 0x23e   : > { %v950_v44 = vpop.permute.xlu1 %949 }
 0x242   : > { %v948_v45 = vpop.permute.xlu1 %947 }
 0x246   : > { %v1114_v46 = vpop.permute.xlu1 %1113 }
 0x24a   : > { %v1281_v49 = vpop.permute.xlu1 %1280 }
 0x24e   : > { %v1279_v51 = vpop.permute.xlu1 %1278 }
 0x2a2   : > { %v859_v32 = vpop.f32.mrb[2].mxu1 }
 0x2a3   : > { %v1829_v33 = vpop.f32.mrb[3].mxu1  ;;  %v863_v34 = vsel %vm786_vm2, %v859_v32, -inf }
 0x2a4   : > { %864 = vmax.xlane.f32.xlu0 %v863_v34 }
 0x331   : > { %v865_v35 = vpop.xlane.xlu0 %864 }
 0x332   : > { %v866_v36 = vsub.f32 %v859_v32, %v865_v35  ;;  %v1462_v32 = vld [vmem:[%s2926_s22 + $0x10] sm:$0xff] }
 0x334   : > { %v867_v37 = vmul.f32 1.442695, %v866_v36 }
 0x336   : > { %2008 = vpow2.f32 %v867_v37 }
 0x340   : > { %v2009_v38 = vpop.eup %2008 }
 0x341   : > { %v869_v39 = vsel %vm786_vm2, %v2009_v38, 0.0 }
 0x342   : > { %870 = vadd.xlane.f32.xlu0 %v869_v39 }
 0x358   : > { %1115 = vrot.lane.b32.xlu0 %v697_v19, %s2319_s26 }
 0x3cf   : > { %v871_v47 = vpop.xlane.xlu0 %870 }
 0x3d0   : > { %2010 = vrcp.f32 %v871_v47 }
 0x3d3   : > { %v1116_v48 = vpop.permute.xlu0 %1115 }
 0x3d4   : > { %1846 = vmatpush3.xpose.msk.msra.mxu0 %vm786_vm2, %v1116_v48 }
 0x3d5   : > { %1855 = vmatprep.subr.mxu0 %v2317_v1 }
 0x3d7   : > { %1848 = vmatmul.mubr.msk.f32.vlgmr.msra.gmra.mrb[4].mxu0 %vm786_vm2, %v1114_v46 }
 0x3d8   : > { %1856 = vmatpush3.xpose.msk.msra.mxu0 %vm786_vm2, %v1281_v49  ;;  %1857 = vmatprep.mubr.msk.f32.mxu0 %vm2316_vm0, %v2317_v1 }
 0x3d9   : > { %1894 = vmatprep.subr.bf16.mxu0 %v2315_v0 }
 0x3da   : > { %v2011_v50 = vpop.eup %2010 }
 0x3db   : > { %v873_v52 = vmul.f32 %v2011_v50, %v2009_v38  ;;  %1858 = vmatmul.mubr.msk.f32.vlgmr.msra.gmra.mrb[6].mxu0 %vm786_vm2, %v1279_v51 }
 0x3dc   : > { %1873 = vmatprep.mubr.msk.f32.mxu0 %vm2316_vm0, %v2317_v1  ;;  %1896 = vmatpush3.bf16.msra.mxu0 %v1895_v31 }
 0x3dd   : > { %1833 = vmatmul.mubr.msk.f32.vlgmr.msra.gmra.mrb[4].mxu1 %vm786_vm2, %v873_v52  ;;  %1897 = vmatprep.subr.bf16.mxu0 %v2315_v0 }
 0x3de   : > { %1836 = vmatpush3.xpose.msk.msra.mxu1 %vm786_vm2, %v950_v44  ;;  %1837 = vmatprep.mubr.msk.f32.mxu1 %vm2316_vm0, %v2317_v1 }
 0x3df   : > { %1840 = vmatprep.subr.mxu1 %v2317_v1 }
 0x3e1   : > { %1838 = vmatmul.mubr.msk.f32.vlgmr.msra.gmra.mrb[6].mxu1 %vm786_vm2, %v948_v45  ;;  %v1750_v45 = vld [vmem:[%s2928_s27] ss:$0 sm:$0xff] }
 0x3e2   : > { %1842 = vmatprep.mubr.msk.f32.mxu1 %vm2316_vm0, %v2317_v1 }
 0x4aa   : > { %v1187_v53 = vpop.f32.mrb[4].mxu0 }
 0x4ab   : > { %v1849_v54 = vpop.f32.mrb[5].mxu0  ;;  %v1191_v55 = vsel %vm786_vm2, %v1187_v53, -inf }
 0x4ac   : > { %1192 = vmax.xlane.f32.xlu0 %v1191_v55 }
 0x4ae   : > { %v1352_v56 = vpop.f32.mrb[6].mxu0 }
 0x4af   : > { %v1859_v57 = vpop.f32.mrb[7].mxu0  ;;  %v1356_v63 = vsel %vm786_vm2, %v1352_v56, -inf }
 0x4b0   : > { %v2760_v58 = vpop.f32.mrb[4].mxu1 }
 0x4b1   : > { %v1834_v59 = vpop.f32.mrb[5].mxu1 }
 0x4b4   : > { %v1021_v60 = vpop.f32.mrb[6].mxu1 }
 0x4b5   : > { %v1839_v61 = vpop.f32.mrb[7].mxu1  ;;  %v1025_v62 = vsel %vm786_vm2, %v1021_v60, -inf }
 0x4b6   : > { %1026 = vmax.xlane.f32.xlu1 %v1025_v62 }
 0x4ba   : > { %1357 = vmax.xlane.f32.xlu1 %v1356_v63 }
 0x539   : > { %v1193_v2 = vpop.xlane.xlu0 %1192 }
 0x53a   : > { %v1194_v3 = vsub.f32 %v1187_v53, %v1193_v2 }
 0x53c   : > { %v1195_v4 = vmul.f32 1.442695, %v1194_v3 }
 0x53e   : > { %2012 = vpow2.f32 %v1195_v4 }
 0x543   : > { %v1027_v5 = vpop.xlane.xlu1 %1026 }
 0x544   : > { %v1028_v13 = vsub.f32 %v1021_v60, %v1027_v5 }
 0x546   : > { %v1029_v14 = vmul.f32 1.442695, %v1028_v13 }
 0x547   : > { %v1358_v6 = vpop.xlane.xlu1 %1357 }
 0x548   : > { %v2013_v7 = vpop.eup %2012  ;;  %v1359_v8 = vsub.f32 %v1352_v56, %v1358_v6 }
 0x549   : > { %v1197_v9 = vsel %vm786_vm2, %v2013_v7, 0.0 }
 0x54a   : > { %v1360_v10 = vmul.f32 1.442695, %v1359_v8  ;;  %1198 = vadd.xlane.f32.xlu0 %v1197_v9 }
 0x54c   : > { %2014 = vpow2.f32 %v1360_v10 }
 0x54d   : > { %2016 = vpow2.f32 %v1029_v14 }
 0x556   : > { %v2015_v11 = vpop.eup %2014 }
 0x557   : > { %v1362_v12 = vsel %vm786_vm2, %v2015_v11, 0.0  ;;  %v2017_v15 = vpop.eup %2016 }
 0x558   : > { %1363 = vadd.xlane.f32.xlu1 %v1362_v12  ;;  %v1031_v16 = vsel %vm786_vm2, %v2017_v15, 0.0 }
 0x560   : > { %1037 = vrot.lane.b32.xlu0 %v2736_v42, %s2318_s29  ;;  %s1559_s29 = sshll.u32 %s528_s7, 4  ;;  %s2808_s29 = int_to_ptr.vmem [resolvable:$true] %s1559_s29 }
 0x561   : > { %s2226_s11 = scalar_lea.vmem %s2808_s29, 128  ;;  %p2233_p6 = scmp.lt.s32.totalorder %s2808_s29, %s2231_s21 }
 0x562   : > { %p2227_p9 = scmp.ne.s32.totalorder %s2808_s29, %s2226_s11  ;;  %p2234_p5 = scmp.lt.s32.totalorder %s2232_s15, %s2226_s11 }
 0x564   : > { %p2228_p11 = pnand %p2227_p9, %p2930_p13  ;;  %p2235_p2 = por %p2234_p5, %p2233_p6 }
 0x566   : > { %p2229_p1 = pneg %p2228_p11 }
 0x568   : > { %p2236_p4 = pnand %p2235_p2, %p2229_p1 }
 0x569   : > { %1202 = vrot.lane.b32.xlu1 %v2736_v42, %s2319_s26 }
 0x58d   : > { %1032 = vadd.xlane.f32.xlu1 %v1031_v16 }
 0x59e   : > { %1367 = vrot.lane.b32.xlu1 %v2736_v42, %s2320_s17 }
 0x5d7   : > { %v1199_v17 = vpop.xlane.xlu0 %1198 }
 0x5db   : > { %v1038_v18 = vpop.permute.xlu0 %1037 }
 0x5dc   : > { %1841 = vmatpush3.msra.mxu1 %v1038_v18 }
 0x5dd   : > { %1850 = vmatprep.subr.mxu1 %v2317_v1 }
 0x5e5   : > { %v1364_v19 = vpop.xlane.xlu1 %1363 }
 0x5e9   : > { %v1203_v20 = vpop.permute.xlu1 %1202 }
 0x61a   : > { %v1033_v21 = vpop.xlane.xlu1 %1032 }
 0x61b   : > { %2018 = vrcp.f32 %v1033_v21 }
 0x61c   : > { %2020 = vrcp.f32 %v1199_v17 }
 0x61d   : > { %2022 = vrcp.f32 %v1364_v19 }
 0x61e   : > { %v1368_v27 = vpop.permute.xlu1 %1367 }
 0x625   : > { %v2019_v22 = vpop.eup %2018 }
 0x626   : > { %v1035_v23 = vmul.f32 %v2019_v22, %v2017_v15  ;;  %v2021_v24 = vpop.eup %2020 }
 0x627   : > { %v1201_v25 = vmul.f32 %v2021_v24, %v2013_v7  ;;  %v2023_v26 = vpop.eup %2022 }
 0x628   : > { %1843 = vmatmul.mubr.msk.f32.vlgmr.msra.gmra.mrb[8].mxu1 %vm786_vm2, %v1035_v23  ;;  %v1366_v28 = vmul.f32 %v2023_v26, %v2015_v11 }
 0x629   : > { %1851 = vmatpush3.msra.mxu1 %v1203_v20  ;;  %1852 = vmatprep.mubr.msk.f32.mxu1 %vm2316_vm0, %v2317_v1 }
 0x62a   : > { %1860 = vmatprep.subr.mxu1 %v2317_v1 }
 0x62c   : > { %1853 = vmatmul.mubr.msk.f32.vlgmr.msra.gmra.mrb[10].mxu1 %vm786_vm2, %v1201_v25 }
 0x62d   : > { %1861 = vmatpush3.msra.mxu1 %v1368_v27  ;;  %1862 = vmatprep.mubr.msk.f32.mxu1 %vm2316_vm0, %v2317_v1  ;;  %v1463_v1 = vld [vmem:[%s2926_s22 + $0x18] sm:$0xff] }
 0x62e   : > { %v1898_v33 = vpack.c.bf16 %v1463_v1, %v1462_v32 }
 0x630   : > { %1863 = vmatmul.mubr.msk.f32.vlgmr.msra.gmra.mrb[12].mxu1 %vm786_vm2, %v1366_v28  ;;  %1899 = vmatpush3.bf16.msra.mxu0 %v1898_v33 }
 0x6fb   : > { %v1109_v34 = vpop.f32.mrb[8].mxu1 }
 0x6fc   : > { %1444 = vrot.lane.b32.xlu0 %v1109_v34, %s2321_s24  ;;  %v1844_v35 = vpop.f32.mrb[9].mxu1 }
 0x6ff   : > { %v1274_v36 = vpop.f32.mrb[10].mxu1 }
 0x700   : > { %1448 = vrot.lane.b32.xlu1 %v1274_v36, %s2322_s30  ;;  %v1854_v37 = vpop.f32.mrb[11].mxu1 }
 0x703   : > { %v1439_v0 = vpop.f32.mrb[12].mxu1 }
 0x704   : > { %1452 = vrot.lane.b32.xlu0 %v1439_v0, %s2323_s12  ;;  %v1864_v38 = vpop.f32.mrb[13].mxu1 }
 0x76e   : > { %v1445_v39 = vpop.permute.xlu0 %1444 }
 0x76f   : > { %v1455_v41 = vsel %vm786_vm2, %v2760_v58, %v1445_v39 }
 0x772   : > { %v1449_v40 = vpop.permute.xlu1 %1448 }
 0x773   : > { %v1457_v42 = vsel %vm1456_vm3, %v1455_v41, %v1449_v40 }
 0x776   : > { %v1453_v43 = vpop.permute.xlu0 %1452 }
 0x777   : > { %v1459_v44 = vsel %vm1458_vm4, %v1457_v42, %v1453_v43 }
 0x778   : > { %1874 = vmatmul.mubr.msk.f32.vlgmr.msra.gmra.mrb[8].mxu0 %vm541_vm1, %v1459_v44 }
 0x84b   : > { %v1540_v46 = vpop.f32.mrb[8].mxu0 }
 0x84c   : > { %v1541_v47 = vadd.f32 %v1750_v45, %v1540_v46  ;;  %v1875_v48 = vpop.f32.mrb[9].mxu0 }
 0x84e   : > { %1544 = vst.msk [vmem:[%s528_s7] sm:$0xff] %vm541_vm1, %v1541_v47 }
 0x84f   : > { %2239 = shalt.err (!%p2236_p4)
}
 0x850   : > { %s2240_s25 = scalar_lea.hbm %s2806_s20, 128  ;;  %s2244_s4 = scalar_lea.hbm %s2929_s14, 256 }
 0x851   : > { %p2241_p10 = scmp.ne.s32.totalorder %s2806_s20, %s2240_s25  ;;  %p2245_p12 = scmp.lt.u32.totalorder %s2806_s20, %s2929_s14 }
 0x852   : > { %p2246_p0 = scmp.lt.u32.totalorder %s2244_s4, %s2240_s25  ;;  %p2248_p9 = scmp.lt.u32.totalorder %s2240_s25, %s2806_s20 }
 0x853   : > { %p2242_p3 = pnand %p2241_p10, %p2930_p13 }
 0x854   : > { %p2247_p7 = por %p2246_p0, %p2245_p12 }
 0x855   : > { %p2243_p8 = pneg %p2242_p3 }
 0x856   : > { %p2249_p11 = por %p2248_p9, %p2247_p7 }
 0x858   : > { %p2250_p1 = pnand %p2249_p11, %p2243_p8 }
 0x85a   : > { %2253 = shalt.err (!%p2250_p1)
}
 0x85b   : > { %1922 = dma.vmem_to_hbm [thread:$0]  (%p2930_p13), %s2808_s29, 128, %s2806_s20, %s1546_s10  }
 0x85c PF: > { %s2931_s12 = sld [smem:[#allocation20_spill]]  ;;  %s2932_s16 = sld [smem:[#allocation25_spill]] }
 0x85d   : > { %s2933_s28 = sld [smem:[#allocation21_spill]] }
 0x862   : > { %s1571_s27 = sand.u32 1, %s2931_s12   ;;  %p2934_p6 = scmp.ne.s32.totalorder %s2932_s16, 0 }
 0x863   : > { %p2935_p5 = scmp.ge.s32.totalorder %s2933_s28, 2  ;;  %s1572_s13 = scalar_lea.sflag [#allocation4], %s1571_s27 }
 0x865   : > { %p1948_p2 = pnand %p2935_p5, %p2934_p6 }
 0x867   : > { %2287 = dma.done.wait (!%p1948_p2), %s1572_s13, 128  }
 0x868   : > { %2289 = vsyncadd (!%p1948_p2), %s1572_s13, 4294967168  ;;  %s2936_s20 = sld [smem:[#allocation22_spill]]  ;;  %s2937_s7 = sld [smem:[#allocation23_spill]] }
 0x869   : > { %s2938_s17 = smov %s2296_s18  ;;  %s2939_s18 = smov %s2300_s19 }
 0x86e   : > { %p29_p4 = scmp.ge.s32.totalorder %s2936_s20, 4   ;;  %s2940_s19 = smov %s2937_s7 }
 0x870   :  { %31 = sbr.rel (!%p29_p4) target bundleno = 17 (0x11), region = 149 }
 0x877   :  { %1577 = vsyncpa [#allocation3], 1 }
 0x878   :  { %1579 = vsyncpa [#allocation3 + $0x1], 1 }
 0x879   :  { %1580 = vsyncpa [#allocation6], 1 }
 0x87a   :  { %1582 = vsyncpa [#allocation6 + $0x1], 1 }
 0x87b   :  { %1583 = vsyncpa [#allocation9], 1 }
 0x87c   :  { %1584 = vsyncpa [#allocation12], 1 }
 0x87d   :  { %1585 = vsyncpa [#allocation4], 1 }
 0x87e   :  { %1587 = vsyncpa [#allocation4 + $0x1], 1 }

</bundles_post_ra>
